<compile_context>
chip_gen: v7x
topology: tpu7x:2x2x1
jax: 0.10.0
libtpu: 0.0.40
codegen_flags: <defaults>
</compile_context>

<pallas_src>
import jax
import jax.numpy as jnp
from jax import lax
from jax.experimental import pallas as pl
from jax.experimental.pallas import tpu as pltpu


# ---------------------------------------------------------------------------
# Host-side: build banded conv weights (absorb horizontal taps + W padding)
# ---------------------------------------------------------------------------
def _build_banded_weight(w_hwio, W):
    """(3,3,Cin,Cout) HWIO weight -> (3, W*Cin, W*Cout) banded matrices.

    B[kh, wcol*Cin + ci, w*Cout + co] = w[kh, wcol - w + 1, ci, co]
    when |wcol - w| <= 1, else 0.  Out-of-image horizontal taps (the 'same'
    conv zero padding in W) simply have no band entry.
    """
    _, _, Cin, Cout = w_hwio.shape
    wcol = jnp.arange(W)[:, None]          # input column index
    wout = jnp.arange(W)[None, :]          # output column index
    kw = wcol - wout + 1                   # horizontal tap index (0..2 valid)
    valid = (kw >= 0) & (kw <= 2)
    kw_c = jnp.clip(kw, 0, 2)
    blocks = w_hwio[:, kw_c, :, :]                          # (3, W, W, Cin, Cout)
    blocks = jnp.where(valid[None, :, :, None, None], blocks, 0.0)
    # -> index (kh, wcol, ci, w, co) then flatten to (3, W*Cin, W*Cout)
    return blocks.transpose(0, 1, 3, 2, 4).reshape(3, W * Cin, W * Cout)


# ---------------------------------------------------------------------------
# Fused Pallas kernel (one batch element per grid step)
# ---------------------------------------------------------------------------
def _make_basic_block_kernel(H, W, Cin, Cmid, Cout):
    def kernel(x_ref, w1_ref, b1_ref, w2_ref, b2_ref, relu_ref, out_ref):
        """
        x_ref   : (1, H, W*Cin)  f32   lane-packed input
        w1_ref  : (3, W*Cin,  W*Cmid) bf16  banded conv1 weights (BN1 scale folded)
        b1_ref  : (1, W*Cmid) f32           tiled BN1 bias
        w2_ref  : (3, W*Cmid, W*Cout) bf16  banded conv2 weights (BN2 scale folded)
        b2_ref  : (1, W*Cout) f32           tiled BN2 bias
        relu_ref: (1, H, W*Cout) f32        relu(out)
        out_ref : (1, H, W*Cout) f32        pre-relu out
        """

        # Height padding of the 'same' conv: shift rows and zero-fill the
        # vacated boundary row (width padding is already inside the banded
        # weights, so no padded scratch and no memsets are needed).
        def shift_down(v):   # row h -> v[h-1], row 0 -> 0
            zero = jnp.zeros((1, v.shape[1]), v.dtype)
            return jnp.concatenate([zero, v[:H - 1, :]], axis=0)

        def shift_up(v):     # row h -> v[h+1], row H-1 -> 0
            zero = jnp.zeros((1, v.shape[1]), v.dtype)
            return jnp.concatenate([v[1:, :], zero], axis=0)

        def conv3x3(v_bf16, w_ref):
            # One MXU matmul per vertical tap; f32 accumulation.
            acc = jnp.dot(v_bf16, w_ref[1], preferred_element_type=jnp.float32)
            acc += jnp.dot(shift_down(v_bf16), w_ref[0],
                           preferred_element_type=jnp.float32)
            acc += jnp.dot(shift_up(v_bf16), w_ref[2],
                           preferred_element_type=jnp.float32)
            return acc

        x32 = x_ref[0]                                  # (H, W*Cin)  f32
        xb = x32.astype(jnp.bfloat16)

        # conv1 + bn1 (scale folded into weights, bias added here) + relu
        y = conv3x3(xb, w1_ref) + b1_ref[...]           # (H, W*Cmid) f32
        y = jnp.maximum(y, 0.0)

        # conv2 + bn2 + residual add (intermediate never leaves registers/VMEM)
        z = conv3x3(y.astype(jnp.bfloat16), w2_ref) + b2_ref[...]
        out = z + x32                                   # Cin == Cout

        out_ref[0] = out.astype(out_ref.dtype)
        relu_ref[0] = jnp.maximum(out, 0.0).astype(relu_ref.dtype)

    return kernel


# ---------------------------------------------------------------------------
# Wrapper
# ---------------------------------------------------------------------------
def basic_block_forward(x_nhwc, params, level):
    """Returns (relu(out), out) exactly like BasicBlock.forward(x, level)."""
    N, H, W, Cin = x_nhwc.shape
    Cmid = params["w1"].shape[-1]
    Cout = params["w2"].shape[-1]
    assert Cin == Cout, "stride=1 / downsample=None path requires Cin == Cout"

    # Fold per-level BN scale into conv weights; keep only bias in-kernel.
    s1 = params["scale1"][level]
    b1 = params["bias1"][level]
    s2 = params["scale2"][level]
    b2 = params["bias2"][level]
    w1b = _build_banded_weight(params["w1"] * s1, W).astype(jnp.bfloat16)
    w2b = _build_banded_weight(params["w2"] * s2, W).astype(jnp.bfloat16)
    bias1 = jnp.tile(b1, W).reshape(1, W * Cmid).astype(jnp.float32)
    bias2 = jnp.tile(b2, W).reshape(1, W * Cout).astype(jnp.float32)

    # Lane-packed layout: (N, H, W*C) is a free (contiguous) view of NHWC.
    x2d = x_nhwc.reshape(N, H, W * Cin)

    kernel = _make_basic_block_kernel(H, W, Cin, Cmid, Cout)

    relu, out = pl.pallas_call(
        kernel,
        out_shape=(
            jax.ShapeDtypeStruct((N, H, W * Cout), x_nhwc.dtype),  # relu(out)
            jax.ShapeDtypeStruct((N, H, W * Cout), x_nhwc.dtype),  # out
        ),
        grid=(N,),
        in_specs=[
            pl.BlockSpec((1, H, W * Cin), lambda n: (n, 0, 0)),
            # Constant operands (index_map never changes across the grid).
            # TODO(synk): at production channel counts mark these
            # pl.Buffered(1) / untiled-VMEM-resident to avoid double-buffering.
            pl.BlockSpec((3, W * Cin, W * Cmid), lambda n: (0, 0, 0)),
            pl.BlockSpec((1, W * Cmid), lambda n: (0, 0)),
            pl.BlockSpec((3, W * Cmid, W * Cout), lambda n: (0, 0, 0)),
            pl.BlockSpec((1, W * Cout), lambda n: (0, 0)),
        ],
        out_specs=(
            pl.BlockSpec((1, H, W * Cout), lambda n: (n, 0, 0)),
            pl.BlockSpec((1, H, W * Cout), lambda n: (n, 0, 0)),
        ),
        compiler_params=pltpu.CompilerParams(
            dimension_semantics=("parallel",),
            vmem_limit_bytes=48 * 1024 * 1024,
        ),
    )(x2d, w1b, bias1, w2b, bias2)

    return relu.reshape(N, H, W, Cout), out.reshape(N, H, W, Cout)


# ---------------------------------------------------------------------------
# Parameters (deterministic, eval-mode BN folded to scale/bias per level)
# ---------------------------------------------------------------------------
def init_basic_block_params(key, inplanes, planes, levels=3, eps=1e-5):
    ks = jax.random.split(key, 4)
    w1 = 0.1 * jax.random.normal(ks[0], (3, 3, inplanes, planes), jnp.float32)
    w2 = 0.1 * jax.random.normal(ks[1], (3, 3, planes, planes), jnp.float32)

    def bn_params(k):
        kg, kb, km, kv = jax.random.split(k, 4)
        gamma = 1.0 + 0.1 * jax.random.normal(kg, (levels, planes), jnp.float32)
        beta = 0.1 * jax.random.normal(kb, (levels, planes), jnp.float32)
        mean = 0.1 * jax.random.normal(km, (levels, planes), jnp.float32)
        var = 1.0 + 0.1 * jnp.abs(jax.random.normal(kv, (levels, planes),
                                                    jnp.float32))
        scale = gamma / jnp.sqrt(var + eps)
        bias = beta - mean * scale
        return scale, bias

    scale1, bias1 = bn_params(ks[2])
    scale2, bias2 = bn_params(ks[3])
    return dict(w1=w1, w2=w2, scale1=scale1, bias1=bias1,
                scale2=scale2, bias2=bias2)


# ---------------------------------------------------------------------------
# Pure-JAX reference (for correctness check)
# ---------------------------------------------------------------------------
def _conv3x3_ref(x, w):
    return lax.conv_general_dilated(
        x, w, window_strides=(1, 1), padding=((1, 1), (1, 1)),
        dimension_numbers=("NHWC", "HWIO", "NHWC"))


def ref_forward(x, params, level):
    y = _conv3x3_ref(x, params["w1"])
    y = y * params["scale1"][level] + params["bias1"][level]
    y = jnp.maximum(y, 0.0)
    y = _conv3x3_ref(y, params["w2"])
    y = y * params["scale2"][level] + params["bias2"][level]
    out = y + x
    return jnp.maximum(out, 0.0), out


# ---------------------------------------------------------------------------
if __name__ == "__main__":
    key = jax.random.PRNGKey(0)
    k_x, k_p = jax.random.split(key)

    N, C, H, W = 2, 4, 16, 16          # inplanes == planes == 4, stride=1
    level = 1                           # pyramid level (0..levels-1)

    x_nchw = jax.random.normal(k_x, (N, C, H, W), jnp.float32)
    x_nhwc = jnp.transpose(x_nchw, (0, 2, 3, 1))   # NCHW -> NHWC

    params = init_basic_block_params(k_p, inplanes=C, planes=C, levels=3)

    relu_out, pre_out = basic_block_forward(x_nhwc, params, level)
    relu_out = jax.block_until_ready(relu_out)
    pre_out = jax.block_until_ready(pre_out)

    relu_ref, pre_ref = ref_forward(x_nhwc, params, level)
    # bf16 MXU operands (f32 accumulation) -> tolerance relaxed vs f32 reference.
    assert jnp.max(jnp.abs(relu_out - relu_ref)) < 5e-2
    assert jnp.max(jnp.abs(pre_out - pre_ref)) < 5e-2

    print("KERNEL_OK")
</pallas_src>

<mosaic_0001>
module attributes {stable_mosaic.version = 11 : i64} {
  func.func @kernel(%arg0: i32, %arg1: memref<1x16x64xf32, #tpu.memory_space<vmem>>, %arg2: memref<3x64x64xbf16, #tpu.memory_space<vmem>>, %arg3: memref<1x64xf32, #tpu.memory_space<vmem>>, %arg4: memref<3x64x64xbf16, #tpu.memory_space<vmem>>, %arg5: memref<1x64xf32, #tpu.memory_space<vmem>>, %arg6: memref<1x16x64xf32, #tpu.memory_space<vmem>>, %arg7: memref<1x16x64xf32, #tpu.memory_space<vmem>>) attributes {dimension_semantics = [#tpu.dimension_semantics<parallel>], iteration_bounds = array<i64: 2>, scalar_prefetch = 0 : i64, scratch_operands = 0 : i64, tpu.core_type = #tpu.core_type<tc>, window_params = [{transform_indices = @transform_0, window_bounds = array<i64: 1, 16, 64>}, {pipeline_mode = #tpu.pipeline_mode<synchronous>, transform_indices = @transform_1, window_bounds = array<i64: 3, 64, 64>}, {pipeline_mode = #tpu.pipeline_mode<synchronous>, transform_indices = @transform_2, window_bounds = array<i64: 1, 64>}, {pipeline_mode = #tpu.pipeline_mode<synchronous>, transform_indices = @transform_3, window_bounds = array<i64: 3, 64, 64>}, {pipeline_mode = #tpu.pipeline_mode<synchronous>, transform_indices = @transform_4, window_bounds = array<i64: 1, 64>}, {transform_indices = @transform_5, window_bounds = array<i64: 1, 16, 64>}, {transform_indices = @transform_6, window_bounds = array<i64: 1, 16, 64>}]} {
    %c0 = arith.constant 0 : index
    %c0_0 = arith.constant 0 : index
    %c0_1 = arith.constant 0 : index
    %0 = vector.load %arg1[%c0, %c0_0, %c0_1] : memref<1x16x64xf32, #tpu.memory_space<vmem>>, vector<1x16x64xf32>
    %1 = vector.shape_cast %0 : vector<1x16x64xf32> to vector<16x64xf32>
    %2 = arith.truncf %1 : vector<16x64xf32> to vector<16x64xbf16>
    %c1 = arith.constant 1 : index
    %c0_2 = arith.constant 0 : index
    %c0_3 = arith.constant 0 : index
    %3 = vector.load %arg2[%c1, %c0_2, %c0_3] : memref<3x64x64xbf16, #tpu.memory_space<vmem>>, vector<1x64x64xbf16>
    %4 = vector.shape_cast %3 : vector<1x64x64xbf16> to vector<64x64xbf16>
    %cst = arith.constant dense<0.000000e+00> : vector<16x64xf32>
    %5 = tpu.matmul %2, %4, %cst {dimension_numbers = #tpu.dot_dimension_numbers<[1], [0], [0], [1], [0, 0, 1, 1], [], []>} : vector<16x64xbf16>, vector<64x64xbf16>, vector<16x64xf32> -> vector<16x64xf32>
    %cst_4 = arith.constant 0.000000e+00 : bf16
    %6 = vector.broadcast %cst_4 : bf16 to vector<1x64xbf16>
    %7 = vector.extract_strided_slice %2 {offsets = [0, 0], sizes = [15, 64], strides = [1, 1]} : vector<16x64xbf16> to vector<15x64xbf16>
    %8 = tpu.concatenate %6, %7 in 0 : vector<1x64xbf16>, vector<15x64xbf16> -> vector<16x64xbf16>
    %c0_5 = arith.constant 0 : index
    %c0_6 = arith.constant 0 : index
    %c0_7 = arith.constant 0 : index
    %9 = vector.load %arg2[%c0_5, %c0_6, %c0_7] : memref<3x64x64xbf16, #tpu.memory_space<vmem>>, vector<1x64x64xbf16>
    %10 = vector.shape_cast %9 : vector<1x64x64xbf16> to vector<64x64xbf16>
    %cst_8 = arith.constant dense<0.000000e+00> : vector<16x64xf32>
    %11 = tpu.matmul %8, %10, %cst_8 {dimension_numbers = #tpu.dot_dimension_numbers<[1], [0], [0], [1], [0, 0, 1, 1], [], []>} : vector<16x64xbf16>, vector<64x64xbf16>, vector<16x64xf32> -> vector<16x64xf32>
    %12 = arith.addf %5, %11 : vector<16x64xf32>
    %cst_9 = arith.constant 0.000000e+00 : bf16
    %13 = vector.broadcast %cst_9 : bf16 to vector<1x64xbf16>
    %14 = vector.extract_strided_slice %2 {offsets = [1, 0], sizes = [15, 64], strides = [1, 1]} : vector<16x64xbf16> to vector<15x64xbf16>
    %15 = tpu.concatenate %14, %13 in 0 : vector<15x64xbf16>, vector<1x64xbf16> -> vector<16x64xbf16>
    %c2 = arith.constant 2 : index
    %c0_10 = arith.constant 0 : index
    %c0_11 = arith.constant 0 : index
    %16 = vector.load %arg2[%c2, %c0_10, %c0_11] : memref<3x64x64xbf16, #tpu.memory_space<vmem>>, vector<1x64x64xbf16>
    %17 = vector.shape_cast %16 : vector<1x64x64xbf16> to vector<64x64xbf16>
    %cst_12 = arith.constant dense<0.000000e+00> : vector<16x64xf32>
    %18 = tpu.matmul %15, %17, %cst_12 {dimension_numbers = #tpu.dot_dimension_numbers<[1], [0], [0], [1], [0, 0, 1, 1], [], []>} : vector<16x64xbf16>, vector<64x64xbf16>, vector<16x64xf32> -> vector<16x64xf32>
    %19 = arith.addf %12, %18 : vector<16x64xf32>
    %c0_13 = arith.constant 0 : index
    %c0_14 = arith.constant 0 : index
    %20 = vector.load %arg3[%c0_13, %c0_14] : memref<1x64xf32, #tpu.memory_space<vmem>>, vector<1x64xf32>
    %21 = vector.broadcast %20 : vector<1x64xf32> to vector<16x64xf32>
    %22 = arith.addf %19, %21 : vector<16x64xf32>
    %cst_15 = arith.constant 0.000000e+00 : f32
    %23 = vector.broadcast %cst_15 : f32 to vector<16x64xf32>
    %24 = arith.maximumf %22, %23 : vector<16x64xf32>
    %25 = arith.truncf %24 : vector<16x64xf32> to vector<16x64xbf16>
    %c1_16 = arith.constant 1 : index
    %c0_17 = arith.constant 0 : index
    %c0_18 = arith.constant 0 : index
    %26 = vector.load %arg4[%c1_16, %c0_17, %c0_18] : memref<3x64x64xbf16, #tpu.memory_space<vmem>>, vector<1x64x64xbf16>
    %27 = vector.shape_cast %26 : vector<1x64x64xbf16> to vector<64x64xbf16>
    %cst_19 = arith.constant dense<0.000000e+00> : vector<16x64xf32>
    %28 = tpu.matmul %25, %27, %cst_19 {dimension_numbers = #tpu.dot_dimension_numbers<[1], [0], [0], [1], [0, 0, 1, 1], [], []>} : vector<16x64xbf16>, vector<64x64xbf16>, vector<16x64xf32> -> vector<16x64xf32>
    %cst_20 = arith.constant 0.000000e+00 : bf16
    %29 = vector.broadcast %cst_20 : bf16 to vector<1x64xbf16>
    %30 = vector.extract_strided_slice %25 {offsets = [0, 0], sizes = [15, 64], strides = [1, 1]} : vector<16x64xbf16> to vector<15x64xbf16>
    %31 = tpu.concatenate %29, %30 in 0 : vector<1x64xbf16>, vector<15x64xbf16> -> vector<16x64xbf16>
    %c0_21 = arith.constant 0 : index
    %c0_22 = arith.constant 0 : index
    %c0_23 = arith.constant 0 : index
    %32 = vector.load %arg4[%c0_21, %c0_22, %c0_23] : memref<3x64x64xbf16, #tpu.memory_space<vmem>>, vector<1x64x64xbf16>
    %33 = vector.shape_cast %32 : vector<1x64x64xbf16> to vector<64x64xbf16>
    %cst_24 = arith.constant dense<0.000000e+00> : vector<16x64xf32>
    %34 = tpu.matmul %31, %33, %cst_24 {dimension_numbers = #tpu.dot_dimension_numbers<[1], [0], [0], [1], [0, 0, 1, 1], [], []>} : vector<16x64xbf16>, vector<64x64xbf16>, vector<16x64xf32> -> vector<16x64xf32>
    %35 = arith.addf %28, %34 : vector<16x64xf32>
    %cst_25 = arith.constant 0.000000e+00 : bf16
    %36 = vector.broadcast %cst_25 : bf16 to vector<1x64xbf16>
    %37 = vector.extract_strided_slice %25 {offsets = [1, 0], sizes = [15, 64], strides = [1, 1]} : vector<16x64xbf16> to vector<15x64xbf16>
    %38 = tpu.concatenate %37, %36 in 0 : vector<15x64xbf16>, vector<1x64xbf16> -> vector<16x64xbf16>
    %c2_26 = arith.constant 2 : index
    %c0_27 = arith.constant 0 : index
    %c0_28 = arith.constant 0 : index
    %39 = vector.load %arg4[%c2_26, %c0_27, %c0_28] : memref<3x64x64xbf16, #tpu.memory_space<vmem>>, vector<1x64x64xbf16>
    %40 = vector.shape_cast %39 : vector<1x64x64xbf16> to vector<64x64xbf16>
    %cst_29 = arith.constant dense<0.000000e+00> : vector<16x64xf32>
    %41 = tpu.matmul %38, %40, %cst_29 {dimension_numbers = #tpu.dot_dimension_numbers<[1], [0], [0], [1], [0, 0, 1, 1], [], []>} : vector<16x64xbf16>, vector<64x64xbf16>, vector<16x64xf32> -> vector<16x64xf32>
    %42 = arith.addf %35, %41 : vector<16x64xf32>
    %c0_30 = arith.constant 0 : index
    %c0_31 = arith.constant 0 : index
    %43 = vector.load %arg5[%c0_30, %c0_31] : memref<1x64xf32, #tpu.memory_space<vmem>>, vector<1x64xf32>
    %44 = vector.broadcast %43 : vector<1x64xf32> to vector<16x64xf32>
    %45 = arith.addf %42, %44 : vector<16x64xf32>
    %46 = arith.addf %45, %1 : vector<16x64xf32>
    %c0_32 = arith.constant 0 : index
    %c0_33 = arith.constant 0 : index
    %c0_34 = arith.constant 0 : index
    %47 = vector.load %arg7[%c0_32, %c0_33, %c0_34] : memref<1x16x64xf32, #tpu.memory_space<vmem>>, vector<1x16x64xf32>
    %48 = vector.shape_cast %47 : vector<1x16x64xf32> to vector<16x64xf32>
    %49 = vector.shape_cast %46 : vector<16x64xf32> to vector<1x16x64xf32>
    tpu.vector_store %arg7[%c0_32, %c0_33, %c0_34], %49 {strides = array<i32>} : memref<1x16x64xf32, #tpu.memory_space<vmem>>, vector<1x16x64xf32>,
    %cst_35 = arith.constant 0.000000e+00 : f32
    %50 = vector.broadcast %cst_35 : f32 to vector<16x64xf32>
    %51 = arith.maximumf %46, %50 : vector<16x64xf32>
    %c0_36 = arith.constant 0 : index
    %c0_37 = arith.constant 0 : index
    %c0_38 = arith.constant 0 : index
    %52 = vector.load %arg6[%c0_36, %c0_37, %c0_38] : memref<1x16x64xf32, #tpu.memory_space<vmem>>, vector<1x16x64xf32>
    %53 = vector.shape_cast %52 : vector<1x16x64xf32> to vector<16x64xf32>
    %54 = vector.shape_cast %51 : vector<16x64xf32> to vector<1x16x64xf32>
    tpu.vector_store %arg6[%c0_36, %c0_37, %c0_38], %54 {strides = array<i32>} : memref<1x16x64xf32, #tpu.memory_space<vmem>>, vector<1x16x64xf32>,
    return
  }
  func.func @transform_0(%arg0: i32) -> (i32, i32, i32) {
    %c0_i32 = arith.constant 0 : i32
    %c0_i32_0 = arith.constant 0 : i32
    %c0_i32_1 = arith.constant 0 : i32
    return %arg0, %c0_i32, %c0_i32_0 : i32, i32, i32
  }
  func.func @transform_1(%arg0: i32) -> (i32, i32, i32) {
    %c0_i32 = arith.constant 0 : i32
    %c0_i32_0 = arith.constant 0 : i32
    %c0_i32_1 = arith.constant 0 : i32
    %c0_i32_2 = arith.constant 0 : i32
    return %c0_i32, %c0_i32_0, %c0_i32_1 : i32, i32, i32
  }
  func.func @transform_2(%arg0: i32) -> (i32, i32) {
    %c0_i32 = arith.constant 0 : i32
    %c0_i32_0 = arith.constant 0 : i32
    %c0_i32_1 = arith.constant 0 : i32
    return %c0_i32, %c0_i32_0 : i32, i32
  }
  func.func @transform_3(%arg0: i32) -> (i32, i32, i32) {
    %c0_i32 = arith.constant 0 : i32
    %c0_i32_0 = arith.constant 0 : i32
    %c0_i32_1 = arith.constant 0 : i32
    %c0_i32_2 = arith.constant 0 : i32
    return %c0_i32, %c0_i32_0, %c0_i32_1 : i32, i32, i32
  }
  func.func @transform_4(%arg0: i32) -> (i32, i32) {
    %c0_i32 = arith.constant 0 : i32
    %c0_i32_0 = arith.constant 0 : i32
    %c0_i32_1 = arith.constant 0 : i32
    return %c0_i32, %c0_i32_0 : i32, i32
  }
  func.func @transform_5(%arg0: i32) -> (i32, i32, i32) {
    %c0_i32 = arith.constant 0 : i32
    %c0_i32_0 = arith.constant 0 : i32
    %c0_i32_1 = arith.constant 0 : i32
    return %arg0, %c0_i32, %c0_i32_0 : i32, i32, i32
  }
  func.func @transform_6(%arg0: i32) -> (i32, i32, i32) {
    %c0_i32 = arith.constant 0 : i32
    %c0_i32_0 = arith.constant 0 : i32
    %c0_i32_1 = arith.constant 0 : i32
    return %arg0, %c0_i32, %c0_i32_0 : i32, i32, i32
  }
}

</mosaic_0001>

<bundles_post_ra>
// kernel: tpu_custom_call.1
= control target key start
LH: loop header
LB: loop body
LE: loop exit
PB: predicated region body
PF: predicated region fallthrough
CT: control target
= control target key end

     0   :  { %12 = vsyncpa [#allocation3], 0  ;;  %s1855_s0 = inlined_call_operand.hbm [shape: f32[2,16,64], index: 0, kind: input, shape index: {}]   ;;  %s1856_s1 = inlined_call_operand.hbm [shape: bf16[3,64,64], index: 1, kind: input, shape index: {}]   ;;  %s1857_s2 = inlined_call_operand.vmem [shape: f32[1,64], index: 2, kind: input, shape index: {}]   ;;  %s1858_s3 = inlined_call_operand.hbm [shape: bf16[3,64,64], index: 3, kind: input, shape index: {}]   ;;  %s1859_s4 = inlined_call_operand.vmem [shape: f32[1,64], index: 4, kind: input, shape index: {}]   ;;  %s1860_s5 = inlined_call_operand.hbm [shape: f32[2,16,64], index: 5, kind: output, shape index: {0}]   ;;  %s1861_s6 = inlined_call_operand.hbm [shape: f32[2,16,64], index: 6, kind: output, shape index: {1}]  }
   0x1   :  { %14 = vsyncpa [#allocation3 + $0x1], 0 }
   0x2   :  { %15 = vsyncpa [#allocation6], 0 }
   0x3   :  { %16 = vsyncpa [#allocation4], 0 }
   0x4   :  { %18 = vsyncpa [#allocation4 + $0x1], 0 }
   0x5   :  { %19 = vsyncpa [#allocation10], 0 }
   0x6   :  { %21 = vsyncpa [#allocation10 + $0x1], 0  ;;  %s1498_s21 = smov 0   ;;  %s1500_s22 = smov 0  }
   0x7   :  { %s1502_s23 = smov 0   ;;  %s1504_s24 = smov 0  }
   0x8 LB: > { %s1519_s25 = sadd.s32 4294967295, %s1448_s24   ;;  %s997_s26 = sadd.s32 4294967294, %s1448_s24   ;;  %s1448_s24 = sphi %s1504_s24, %s1885_s24   ;;  %s1444_s23 = sphi %s1502_s23, %s1884_s23   ;;  %s1440_s22 = sphi %s1500_s22, %s1883_s22   ;;  %s1436_s21 = sphi %s1498_s21, %s1882_s21  }
   0x9   : > { %p47_p0 = scmp.ne.s32.totalorder %s1440_s22, %s1436_s21  ;;  %p1862_p1 = scmp.eq.s32.totalorder %s1519_s25, 0 }
   0xa   : > { %p161_p3 = scmp.eq.s32.totalorder %s997_s26, 1  ;;  %p998_p5 = scmp.ge.s32.totalorder %s1448_s24, 1 }
   0xb   : > { %p1528_p4 = por %p1862_p1, %p47_p0  ;;  %p194_p7 = scmp.lt.s32.totalorder %s1448_s24, 3 }
   0xc   : > { %p1533_p6 = por %p161_p3, %p47_p0  ;;  %s1450_s30 = smov [#allocation5]  }
   0xd   : > { %s1865_s27 = scalar_select %p1528_p4, 1, 0 }
   0xe   : > { %s1866_s28 = scalar_select %p1533_p6, 1, 0 }
   0xf   : > { %p1538_p8 = pnand %p998_p5, %p194_p7  ;;  %s206_s7 = sshll.u32 %s1450_s30, 4  ;;  %s1542_s7 = int_to_ptr.vmem [resolvable:$true] %s206_s7 }
  0x10   : > { %s1451_s9 = smov [#allocation7]   ;;  %s1260_s13 = scalar_lea.hbm %s1856_s1, 1536 }
  0x11   : > { %p1170_p9 = pneg %p1538_p8  ;;  %s222_s10 = sshll.u32 %s1451_s9, 4  ;;  %s1553_s10 = int_to_ptr.vmem [resolvable:$true] %s222_s10 }
  0x12   : > { %p1261_p12 = scmp.ne.s32.totalorder %s1856_s1, %s1260_s13  ;;  %p1267_p5 = scmp.lt.u32.totalorder %s1260_s13, %s1856_s1 }
  0x13   : > { %p1549_p11 = pnand %p1170_p9, %p1862_p1 }
  0x15   : > { %p1262_p13 = pneg %p1549_p11 }
  0x17   : > { %p1263_p0 = pnand %p1262_p13, %p1261_p12 }
  0x19   : > { %p1264_p3 = pneg %p1263_p0 }
  0x1b   : > { %p1269_p7 = pnand %p1267_p5, %p1264_p3 }
  0x1d   : > { %1272 = shalt.err (!%p1269_p7)
}
  0x1e   : > { %s1273_s18 = scalar_lea.vmem %s1542_s7, 1536  ;;  %p1281_p2 = scmp.lt.s32.totalorder %s1542_s7, %s1542_s7 }
  0x1f   : > { %p1274_p9 = scmp.ne.s32.totalorder %s1542_s7, %s1273_s18  ;;  %p1282_p12 = scmp.lt.s32.totalorder %s1273_s18, %s1273_s18 }
  0x21   : > { %p1276_p10 = pnand %p1274_p9, %p1262_p13  ;;  %p1283_p0 = por %p1282_p12, %p1281_p2 }
  0x23   : > { %p1277_p1 = pneg %p1276_p10 }
  0x25   : > { %p1284_p6 = pnand %p1283_p0, %p1277_p1 }
  0x27   : > { %1287 = shalt.err (!%p1284_p6)
}
  0x28   : > { %s1452_s19 = smov 64   ;;  %s1453_s20 = smov 4  }
  0x29   : > { %1173 = dma.hbm_to_vmem [thread:$0]  (!%p1549_p11), %s1856_s1, 1536, %s1542_s7, [#allocation6], %s1452_s19, %s1452_s19, %s1453_s20  }
  0x2a   : > { %s1288_s12 = scalar_lea.hbm %s1858_s3, 1536 }
  0x2b   : > { %p1289_p2 = scmp.ne.s32.totalorder %s1858_s3, %s1288_s12  ;;  %p1295_p10 = scmp.lt.u32.totalorder %s1288_s12, %s1858_s3 }
  0x2d   : > { %p1291_p1 = pnand %p1289_p2, %p1262_p13 }
  0x2f   : > { %p1292_p6 = pneg %p1291_p1 }
  0x31   : > { %p1297_p3 = pnand %p1295_p10, %p1292_p6 }
  0x33   : > { %1300 = shalt.err (!%p1297_p3)
}
  0x34   : > { %s1301_s7 = scalar_lea.vmem %s1553_s10, 1536  ;;  %p1309_p12 = scmp.lt.s32.totalorder %s1553_s10, %s1553_s10 }
  0x35   : > { %p1302_p5 = scmp.ne.s32.totalorder %s1553_s10, %s1301_s7  ;;  %p1310_p0 = scmp.lt.s32.totalorder %s1301_s7, %s1301_s7 }
  0x37   : > { %p1304_p7 = pnand %p1302_p5, %p1262_p13  ;;  %p1311_p2 = por %p1310_p0, %p1309_p12 }
  0x39   : > { %p1305_p9 = pneg %p1304_p7 }
  0x3b   : > { %p1312_p1 = pnand %p1311_p2, %p1305_p9 }
  0x3d   : > { %1315 = shalt.err (!%p1312_p1)
}
  0x3e   : > { %1176 = dma.hbm_to_vmem [thread:$0]  (!%p1549_p11), %s1858_s3, 1536, %s1553_s10, [#allocation6], %s1452_s19, %s1452_s19, %s1453_s20  }
  0x3f   : > { %s1608_s26 = sadd.s32 1, %s1448_s24   ;;  %s34_s8 = sadd.s32 1, %s1444_s23 }
  0x40   : > { %s31_s30 = ssub.s32 %s1448_s24, %s1608_s26  ;;  %p41_p13 = scmp.ne.s32.totalorder %s1444_s23, %s1440_s22 }
  0x41   : > { %p32_p6 = scmp.eq.s32.totalorder %s31_s30, 0  ;;  %p42_p10 = scmp.eq.s32.totalorder %s1448_s24, 0 }
  0x42   : > { %p1869_p3 = scmp.eq.s32.totalorder %s1519_s25, 1  ;;  %p1190_p7 = scmp.lt.s32.totalorder %s1448_s24, 2 }
  0x43   : > { %s1624_s11 = scalar_select %p32_p6, %s1444_s23, %s34_s8  }
  0x44   : > { %p1618_p5 = por %p1869_p3, %p41_p13  ;;  %p43_p9 = por %p42_p10, %p41_p13 }
  0x45   : > { %s239_s12 = sand.u32 1, %s1444_s23   ;;  %s1051_s10 = sshll.u32 %s1448_s24, 8 }
  0x46   : > { %s1870_s9 = scalar_select %p1618_p5, 1, 0 }
  0x47   : > { %s1002_s13 = sshll.u32 %s239_s12, 4  ;;  %s1631_s14 = scalar_lea.hbm %s1855_s0, %s1051_s10 }
  0x48   : > { %s243_s15 = scalar_lea.vmem [#allocation2], %s1002_s13  ;;  %p1635_p11 = pnand %p1190_p7, %p43_p9 }
  0x49   : > { %s250_s16 = sshll.u32 %s243_s15, 4  ;;  %s1639_s17 = scalar_lea.sflag [#allocation3], %s239_s12  ;;  %s1633_s16 = int_to_ptr.vmem [resolvable:$true] %s250_s16 }
  0x4a   : > { %s1316_s18 = scalar_lea.hbm %s1631_s14, 256  ;;  %p1318_p0 = pneg %p1635_p11 }
  0x4b   : > { %p1317_p12 = scmp.ne.s32.totalorder %s1631_s14, %s1316_s18  ;;  %s1321_s13 = scalar_lea.hbm %s1855_s0, 512 }
  0x4c   : > { %p1322_p13 = scmp.lt.u32.totalorder %s1631_s14, %s1855_s0  ;;  %p1323_p6 = scmp.lt.u32.totalorder %s1321_s13, %s1316_s18 }
  0x4d   : > { %p1319_p2 = pnand %p1318_p0, %p1317_p12  ;;  %p1325_p3 = scmp.lt.u32.totalorder %s1316_s18, %s1631_s14 }
  0x4e   : > { %p1324_p10 = por %p1323_p6, %p1322_p13 }
  0x4f   : > { %p1320_p1 = pneg %p1319_p2 }
  0x50   : > { %p1326_p7 = por %p1325_p3, %p1324_p10 }
  0x52   : > { %p1327_p9 = pnand %p1326_p7, %p1320_p1 }
  0x54   : > { %1330 = shalt.err (!%p1327_p9)
}
  0x55   : > { %s1331_s12 = scalar_lea.vmem %s1633_s16, 256  ;;  %s1454_s20 = smov [#allocation2]  }
  0x56   : > { %p1332_p12 = scmp.ne.s32.totalorder %s1633_s16, %s1331_s12  ;;  %s1336_s15 = sshll.u32 %s1454_s20, 4  ;;  %s1337_s15 = int_to_ptr.vmem [resolvable:$false] %s1336_s15 }
  0x57   : > { %s1338_s8 = scalar_lea.vmem %s1337_s15, 512  ;;  %p1339_p4 = scmp.lt.s32.totalorder %s1633_s16, %s1337_s15 }
  0x58   : > { %p1334_p2 = pnand %p1332_p12, %p1318_p0  ;;  %p1340_p13 = scmp.lt.s32.totalorder %s1338_s8, %s1331_s12 }
  0x5a   : > { %p1335_p5 = pneg %p1334_p2  ;;  %p1341_p6 = por %p1340_p13, %p1339_p4 }
  0x5c   : > { %p1342_p10 = pnand %p1341_p6, %p1335_p5 }
  0x5e   : > { %1345 = shalt.err (!%p1342_p10)
}
  0x5f   : > { %s1455_s18 = smov 128   ;;  %s1456_s30 = smov 8  }
  0x60   : > { %1180 = dma.hbm_to_vmem [thread:$0]  (!%p1635_p11), %s1631_s14, 256, %s1633_s16, %s1639_s17, %s1455_s18, %s1455_s18, %s1456_s30  }
  0x61   : > { %262 = sbr.rel (%p1538_p8) target bundleno = 645 (0x285), region = 40  ;;  %s1670_s13 = sand.u32 (!%p1538_p8), 1, %s1440_s22  }
  0x62   : > { %s1673_s10 = sshll.u32 (!%p1538_p8), %s1670_s13, 4  ;;  %s265_s19 = scalar_lea.sflag (!%p1538_p8), [#allocation3], %s1670_s13 }
  0x63   : > { %s268_s12 = scalar_lea.vmem (!%p1538_p8), [#allocation2], %s1673_s10  ;;  %p1872_p4 = scmp.ne.s32.totalorder (!%p1538_p8), %s1865_s27, 0 }
  0x68   : > { %1419 = dma.done.wait (%p1872_p4), %s265_s19, 256  }
  0x69   : > { %1421 = vsyncadd (%p1872_p4), %s265_s19, 4294967040  ;;  %p1873_p5 = scmp.eq.s32.totalorder %s1519_s25, 0 }
  0x6b   : > { %1423 = dma.done.wait (%p1873_p5), [#allocation6], 3072   ;;  %p1874_p8 = pmov %p1873_p5 }
  0x6c   : > { %v1457_v0 = vmov 0.0   ;;  %vm1458_vm0 = vmmov 0   ;;  %v1236_v1 = vld [vmem:[#allocation5] sm:$0xff]   ;;  %v1238_v3 = vld [vmem:[#allocation5 + $0x8] sm:$0xff]   ;;  %v1240_v5 = vld [vmem:[#allocation5 + $0x10] sm:$0xff]   ;;  %vm331_vm1 = vcmask 1040384  }
  0x6d   : > { %1425 = vsyncadd (%p1874_p8), [#allocation6], 4294964224  ;;  %1084 = vmatprep.subr.bf16.mxu0 %v1457_v0  ;;  %1096 = vmatprep.subr.bf16.mxu1 %v1457_v0  ;;  %v1237_v2 = vld [vmem:[#allocation5 + $0x20] sm:$0xff]   ;;  %v1239_v4 = vld [vmem:[#allocation5 + $0x28] sm:$0xff]   ;;  %vm332_vm2 = vsmask.f32 256 }
  0x6e   : > { %1092 = vmatprep.mubr.msk.bf16.mxu0 %vm1458_vm0, %v1457_v0  ;;  %1104 = vmatprep.mubr.msk.bf16.mxu1 %vm1458_vm0, %v1457_v0  ;;  %v1241_v6 = vld [vmem:[#allocation5 + $0x30] sm:$0xff]   ;;  %v1697_v8 = vld [vmem:[%s268_s12 + $0x8] sm:$0xff]  ;;  %vm1702_vm3 = vmand %vm331_vm1, %vm332_vm2  ;;  %vm367_vm4 = vcmask 523264   ;;  %vm482_vm5 = vcmask 1047552   ;;  %vm483_vm6 = vsmask.f32 7424 }
  0x6f   : > { %1085 = vmatpush3.bf16.msra.mxu0 %v1236_v1  ;;  %1097 = vmatpush3.bf16.msra.mxu1 %v1237_v2  ;;  %v1695_v7 = vld [vmem:[%s268_s12] sm:$0xff]  ;;  %v1242_v10 = vld [vmem:[#allocation5 + $0x18] sm:$0xff]   ;;  %v1245_v19 = vld [vmem:[#allocation5 + $0x48] sm:$0xff]   ;;  %s1052_s7 = sshll.u32 %s1519_s25, 8  ;;  %s309_s17 = scalar_lea.vmem [#allocation9], %s1673_s10 }
  0x70   : > { %1086 = vmatprep.subr.bf16.mxu0 %v1457_v0  ;;  %1098 = vmatprep.subr.bf16.mxu1 %v1457_v0  ;;  %v313_v9 = vpack.c.bf16 %v1697_v8, %v1695_v7  ;;  %v1243_v11 = vld [vmem:[#allocation5 + $0x38] sm:$0xff]   ;;  %v1244_v16 = vld [vmem:[#allocation5 + $0x40] sm:$0xff]   ;;  %v1246_v21 = vld [vmem:[#allocation5 + $0x50] sm:$0xff]   ;;  %s873_s20 = sshll.u32 %s309_s17, 4  ;;  %s1759_s15 = scalar_lea.vmem [#allocation8], %s1673_s10  ;;  %s1769_s20 = int_to_ptr.vmem [resolvable:$true] %s873_s20 }
  0x71   : > { %v1247_v22 = vld [vmem:[#allocation5 + $0x58] sm:$0xff]   ;;  %vm1720_vm7 = vmand %vm482_vm5, %vm483_vm6  ;;  %v1248_v26 = vld [vmem:[#allocation7 + $0x20] sm:$0xff]   ;;  %s857_s8 = sshll.u32 %s1759_s15, 4  ;;  %s1767_s25 = scalar_lea.hbm %s1861_s6, %s1052_s7  ;;  %s1779_s8 = int_to_ptr.vmem [resolvable:$true] %s857_s8 }
  0x72   : > { %v324_v12 = vshrl.u32 %v313_v9, 16  ;;  %v327_v13 = vshll.u32 %v313_v9, 16  ;;  %v1249_v27 = vld [vmem:[#allocation7 + $0x28] sm:$0xff]   ;;  %v1250_v28 = vld [vmem:[#allocation7] sm:$0xff]   ;;  %v1251_v29 = vld [vmem:[#allocation7 + $0x30] sm:$0xff]   ;;  %s1777_s12 = scalar_lea.hbm %s1860_s5, %s1052_s7  ;;  %s844_s27 = scalar_lea.sflag [#allocation10], %s1670_s13 }
  0x73   : > { %1087 = vmatpush3.bf16.msra.mxu0 %v1238_v3  ;;  %1099 = vmatpush3.bf16.msra.mxu1 %v1239_v4  ;;  %v1252_v30 = vld [vmem:[#allocation7 + $0x8] sm:$0xff]   ;;  %v1253_v31 = vld [vmem:[#allocation7 + $0x38] sm:$0xff]   ;;  %v1254_v32 = vld [vmem:[#allocation7 + $0x10] sm:$0xff]   ;;  %s1346_s29 = scalar_lea.vmem %s1769_s20, 256  ;;  %p1879_p0 = scmp.ne.s32.totalorder %s1870_s9, 0 }
  0x74   : > { %1088 = vmatprep.subr.bf16.mxu0 %v1457_v0  ;;  %1100 = vmatprep.subr.bf16.mxu1 %v1457_v0  ;;  %v326_v15 = vrot.slane %v324_v12, 7  ;;  %v479_v20 = vrot.slane %v327_v13, 1  ;;  %v1255_v33 = vld [vmem:[#allocation7 + $0x18] sm:$0xff]   ;;  %v1026_v45 = vld [vmem:[%s1857_s2] ss:$0 sm:$0xff]  ;;  %v1257_v62 = vld [vmem:[#allocation7 + $0x48] sm:$0xff]   ;;  %p1347_p11 = scmp.ne.s32.totalorder %s1769_s20, %s1346_s29 }
  0x75   : > { %v1256_v60 = vld [vmem:[#allocation7 + $0x40] sm:$0xff]   ;;  %v1258_v63 = vld [vmem:[#allocation7 + $0x50] sm:$0xff]   ;;  %v1259_v2 = vld [vmem:[#allocation7 + $0x58] sm:$0xff]   ;;  %s1459_s14 = smov [#allocation9]  }
  0x76   : > { %v329_v17 = vor.u32 %v327_v13, %v326_v15  ;;  %v480_v23 = vor.u32 %v479_v20, %v324_v12  ;;  %p1348_p1 = pnand %p1347_p11, %p1879_p0  ;;  %s1350_s16 = sshll.u32 %s1459_s14, 4  ;;  %s1351_s16 = int_to_ptr.vmem [resolvable:$false] %s1350_s16 }
  0x77   : > { %1089 = vmatpush3.bf16.msra.mxu0 %v1240_v5  ;;  %1101 = vmatpush3.bf16.msra.mxu1 %v1241_v6  ;;  %s1352_s18 = scalar_lea.vmem %s1351_s16, 512  ;;  %p1353_p7 = scmp.lt.s32.totalorder %s1769_s20, %s1351_s16 }
  0x78   : > { %1090 = vmatprep.subr.bf16.mxu0 %v1457_v0  ;;  %1102 = vmatprep.subr.bf16.mxu1 %v1457_v0  ;;  %v334_v18 = vsel %vm1702_vm3, 0, %v329_v17  ;;  %v485_v25 = vsel %vm1720_vm7, %v480_v23, 0  ;;  %v1042_v17 = vld [vmem:[%s1859_s4] ss:$0 sm:$0xff]  ;;  %p1349_p3 = pneg %p1348_p1  ;;  %p1354_p9 = scmp.lt.s32.totalorder %s1352_s18, %s1346_s29 }
  0x7a   : > { %p1355_p12 = por %p1354_p9, %p1353_p7 }
  0x7b   : > { %1091 = vmatpush3.bf16.msra.mxu0 %v1242_v10  ;;  %1103 = vmatpush3.bf16.msra.mxu1 %v1243_v11 }
  0x7c   : > { %1108 = vmatprep.subr.bf16.mxu0 %v1457_v0  ;;  %1120 = vmatprep.subr.bf16.mxu1 %v1457_v0  ;;  %p1356_p2 = pnand %p1355_p12, %p1349_p3 }
  0x7e   : > { %1093 = vmatmul.mubr.msk.bf16.vlgmr.msra.gmra.mrb[0].mxu0 %vm367_vm4, %v334_v18  ;;  %1105 = vmatmul.mubr.msk.bf16.vlgmr.msra.gmra.mrb[0].mxu1 %vm367_vm4, %v313_v9 }
  0x7f   : > { %1109 = vmatpush3.bf16.msra.mxu0 %v1244_v16  ;;  %1116 = vmatprep.mubr.msk.bf16.mxu0 %vm1458_vm0, %v1457_v0 }
  0x80   : > { %1110 = vmatprep.subr.bf16.mxu0 %v1457_v0  ;;  %1128 = vmatprep.mubr.msk.bf16.mxu1 %vm1458_vm0, %v1457_v0 }
  0x81   : > { %1121 = vmatpush3.bf16.msra.mxu1 %v1250_v28 }
  0x82   : > { %1122 = vmatprep.subr.bf16.mxu1 %v1457_v0 }
  0x83   : > { %1111 = vmatpush3.bf16.msra.mxu0 %v1245_v19 }
  0x84   : > { %1112 = vmatprep.subr.bf16.mxu0 %v1457_v0 }
  0x85   : > { %1123 = vmatpush3.bf16.msra.mxu1 %v1252_v30 }
  0x86   : > { %1124 = vmatprep.subr.bf16.mxu1 %v1457_v0 }
  0x87   : > { %1113 = vmatpush3.bf16.msra.mxu0 %v1246_v21 }
  0x88   : > { %1114 = vmatprep.subr.bf16.mxu0 %v1457_v0 }
  0x89   : > { %1125 = vmatpush3.bf16.msra.mxu1 %v1254_v32 }
  0x8a   : > { %1126 = vmatprep.subr.bf16.mxu1 %v1457_v0 }
  0x8b   : > { %1115 = vmatpush3.bf16.msra.mxu0 %v1247_v22 }
  0x8c   : > { %1132 = vmatprep.subr.bf16.mxu0 %v1457_v0 }
  0x8d   : > { %1127 = vmatpush3.bf16.msra.mxu1 %v1255_v33 }
  0x8e   : > { %1117 = vmatmul.mubr.msk.bf16.vlgmr.msra.gmra.mrb[4].mxu0 %vm367_vm4, %v485_v25  ;;  %1144 = vmatprep.subr.bf16.mxu1 %v1457_v0 }
  0x8f   : > { %1140 = vmatprep.mubr.msk.bf16.mxu0 %vm1458_vm0, %v1457_v0  ;;  %1133 = vmatpush3.bf16.msra.mxu0 %v1248_v26 }
  0x90   : > { %1134 = vmatprep.subr.bf16.mxu0 %v1457_v0 }
  0x93   : > { %1135 = vmatpush3.bf16.msra.mxu0 %v1249_v27 }
  0x94   : > { %1136 = vmatprep.subr.bf16.mxu0 %v1457_v0 }
  0x97   : > { %1137 = vmatpush3.bf16.msra.mxu0 %v1251_v29 }
  0x98   : > { %1138 = vmatprep.subr.bf16.mxu0 %v1457_v0 }
  0x9b   : > { %1139 = vmatpush3.bf16.msra.mxu0 %v1253_v31 }
 0x151   : > { %v405_v34 = vpop.f32.mrb[0].mxu0  ;;  %v472_v35 = vpop.f32.mrb[0].mxu1 }
 0x152   : > { %v473_v36 = vadd.f32 %v472_v35, %v405_v34  ;;  %v1094_v37 = vpop.f32.mrb[1].mxu0  ;;  %v1106_v38 = vpop.f32.mrb[1].mxu1 }
 0x153   : > { %v408_v39 = vpop.f32.mrb[2].mxu0  ;;  %v475_v40 = vpop.f32.mrb[2].mxu1 }
 0x154   : > { %v476_v41 = vadd.f32 %v475_v40, %v408_v39  ;;  %v1095_v42 = vpop.f32.mrb[3].mxu0  ;;  %v1107_v43 = vpop.f32.mrb[3].mxu1 }
 0x161   : > { %v556_v44 = vpop.f32.mrb[4].mxu0 }
 0x162   : > { %v563_v46 = vadd.f32 %v556_v44, %v473_v36  ;;  %v1118_v47 = vpop.f32.mrb[5].mxu0 }
 0x163   : > { %v559_v48 = vpop.f32.mrb[6].mxu0 }
 0x164   : > { %v572_v49 = vadd.f32 %v1026_v45, %v563_v46  ;;  %v564_v50 = vadd.f32 %v559_v48, %v476_v41  ;;  %v1119_v51 = vpop.f32.mrb[7].mxu0 }
 0x166   : > { %v573_v52 = vadd.f32 %v1026_v45, %v564_v50  ;;  %v574_v53 = vmax.f32 %v572_v49, 0.0 }
 0x168   : > { %v575_v54 = vmax.f32 %v573_v52, 0.0 }
 0x16a   : > { %v576_v55 = vpack.c.bf16 %v575_v54, %v574_v53 }
 0x16c   : > { %v587_v56 = vshrl.u32 %v576_v55, 16  ;;  %1141 = vmatmul.mubr.msk.bf16.vlgmr.msra.gmra.mrb[8].mxu0 %vm367_vm4, %v576_v55  ;;  %v590_v57 = vshll.u32 %v576_v55, 16 }
 0x16e   : > { %v589_v58 = vrot.slane %v587_v56, 7  ;;  %v738_v1 = vrot.slane %v590_v57, 1 }
 0x170   : > { %v592_v59 = vor.u32 %v590_v57, %v589_v58  ;;  %v739_v3 = vor.u32 %v738_v1, %v587_v56 }
 0x172   : > { %v594_v61 = vsel %vm1702_vm3, 0, %v592_v59  ;;  %v741_v4 = vsel %vm1720_vm7, %v739_v3, 0 }
 0x173   : > { %1129 = vmatmul.mubr.msk.bf16.vlgmr.msra.gmra.mrb[4].mxu1 %vm367_vm4, %v594_v61 }
 0x174   : > { %1145 = vmatpush3.bf16.msra.mxu1 %v1256_v60  ;;  %1152 = vmatprep.mubr.msk.bf16.mxu1 %vm1458_vm0, %v1457_v0 }
 0x175   : > { %1146 = vmatprep.subr.bf16.mxu1 %v1457_v0 }
 0x178   : > { %1147 = vmatpush3.bf16.msra.mxu1 %v1257_v62 }
 0x179   : > { %1148 = vmatprep.subr.bf16.mxu1 %v1457_v0 }
 0x17c   : > { %1149 = vmatpush3.bf16.msra.mxu1 %v1258_v63 }
 0x17d   : > { %1150 = vmatprep.subr.bf16.mxu1 %v1457_v0 }
 0x180   : > { %1151 = vmatpush3.bf16.msra.mxu1 %v1259_v2 }
 0x183   : > { %1153 = vmatmul.mubr.msk.bf16.vlgmr.msra.gmra.mrb[8].mxu1 %vm367_vm4, %v741_v4 }
 0x23f   : > { %v731_v5 = vpop.f32.mrb[8].mxu0 }
 0x240   : > { %v1142_v6 = vpop.f32.mrb[9].mxu0 }
 0x241   : > { %v734_v9 = vpop.f32.mrb[10].mxu0 }
 0x242   : > { %v1143_v10 = vpop.f32.mrb[11].mxu0 }
 0x246   : > { %v664_v11 = vpop.f32.mrb[4].mxu1 }
 0x247   : > { %v732_v12 = vadd.f32 %v731_v5, %v664_v11  ;;  %v1130_v13 = vpop.f32.mrb[5].mxu1 }
 0x248   : > { %v667_v14 = vpop.f32.mrb[6].mxu1 }
 0x249   : > { %v735_v15 = vadd.f32 %v734_v9, %v667_v14  ;;  %v1131_v0 = vpop.f32.mrb[7].mxu1 }
 0x256   : > { %v812_v16 = vpop.f32.mrb[8].mxu1 }
 0x257   : > { %v819_v18 = vadd.f32 %v812_v16, %v732_v12  ;;  %v1154_v19 = vpop.f32.mrb[9].mxu1 }
 0x258   : > { %v815_v20 = vpop.f32.mrb[10].mxu1 }
 0x259   : > { %v828_v21 = vadd.f32 %v1042_v17, %v819_v18  ;;  %v820_v22 = vadd.f32 %v815_v20, %v735_v15  ;;  %v1155_v23 = vpop.f32.mrb[11].mxu1 }
 0x25b   : > { %v830_v24 = vadd.f32 %v828_v21, %v1695_v7  ;;  %v829_v25 = vadd.f32 %v1042_v17, %v820_v22 }
 0x25d   : > { %832 = vst.msk [vmem:[%s309_s17] sm:$0xff] %vm367_vm4, %v830_v24  ;;  %v834_v26 = vmax.f32 %v830_v24, 0.0  ;;  %v831_v27 = vadd.f32 %v829_v25, %v1697_v8 }
 0x25f   : > { %836 = vst.msk [vmem:[%s1759_s15] sm:$0xff] %vm367_vm4, %v834_v26  ;;  %833 = vst.msk [vmem:[%s309_s17 + $0x8] sm:$0xff] %vm367_vm4, %v831_v27  ;;  %v835_v7 = vmax.f32 %v831_v27, 0.0 }
 0x260   : > { %1359 = shalt.err (!%p1356_p2)
}
 0x261   : > { %s1360_s7 = scalar_lea.hbm %s1767_s25, 256  ;;  %s1364_s10 = scalar_lea.hbm %s1861_s6, 512 }
 0x262   : > { %p1361_p13 = scmp.ne.s32.totalorder %s1767_s25, %s1360_s7  ;;  %p1365_p4 = scmp.lt.u32.totalorder %s1767_s25, %s1861_s6 }
 0x263   : > { %p1366_p5 = scmp.lt.u32.totalorder %s1364_s10, %s1360_s7  ;;  %p1368_p11 = scmp.lt.u32.totalorder %s1360_s7, %s1767_s25 }
 0x264   : > { %p1362_p6 = pnand %p1361_p13, %p1879_p0 }
 0x265   : > { %p1367_p8 = por %p1366_p5, %p1365_p4 }
 0x266   : > { %p1363_p10 = pneg %p1362_p6 }
 0x267   : > { %p1369_p1 = por %p1368_p11, %p1367_p8 }
 0x269   : > { %p1370_p3 = pnand %p1369_p1, %p1363_p10 }
 0x26b   : > { %1373 = shalt.err (!%p1370_p3)
}
 0x26c   : > { %s1460_s29 = smov 128   ;;  %s1461_s16 = smov 8   ;;  %837 = vst.msk [vmem:[%s1759_s15 + $0x8] sm:$0xff] %vm367_vm4, %v835_v7 }
 0x26d   : > { %1167 = dma.vmem_to_hbm [thread:$0]  (%p1879_p0), %s1769_s20, 256, %s1767_s25, %s844_s27, %s1460_s29, %s1460_s29, %s1461_s16  }
 0x26e   : > { %s839_s18 = scalar_lea.sflag [#allocation4], %s1670_s13  ;;  %s1374_s7 = scalar_lea.vmem %s1779_s8, 256 }
 0x26f   : > { %p1375_p7 = scmp.ne.s32.totalorder %s1779_s8, %s1374_s7  ;;  %s1462_s17 = smov [#allocation8]  }
 0x270   : > { %s1378_s30 = sshll.u32 %s1462_s17, 4  ;;  %s1379_s30 = int_to_ptr.vmem [resolvable:$false] %s1378_s30 }
 0x271   : > { %p1376_p9 = pnand %p1375_p7, %p1879_p0  ;;  %s1380_s10 = scalar_lea.vmem %s1379_s30, 512 }
 0x272   : > { %p1381_p2 = scmp.lt.s32.totalorder %s1779_s8, %s1379_s30  ;;  %p1382_p13 = scmp.lt.s32.totalorder %s1380_s10, %s1374_s7 }
 0x273   : > { %p1377_p12 = pneg %p1376_p9 }
 0x274   : > { %p1383_p6 = por %p1382_p13, %p1381_p2 }
 0x276   : > { %p1384_p10 = pnand %p1383_p6, %p1377_p12 }
 0x278   : > { %1387 = shalt.err (!%p1384_p10)
}
 0x279   : > { %s1388_s20 = scalar_lea.hbm %s1777_s12, 256  ;;  %s1392_s27 = scalar_lea.hbm %s1860_s5, 512 }
 0x27a   : > { %p1389_p4 = scmp.ne.s32.totalorder %s1777_s12, %s1388_s20  ;;  %p1393_p11 = scmp.lt.u32.totalorder %s1777_s12, %s1860_s5 }
 0x27b   : > { %p1394_p1 = scmp.lt.u32.totalorder %s1392_s27, %s1388_s20  ;;  %p1396_p7 = scmp.lt.u32.totalorder %s1388_s20, %s1777_s12 }
 0x27c   : > { %p1390_p5 = pnand %p1389_p4, %p1879_p0 }
 0x27d   : > { %p1395_p3 = por %p1394_p1, %p1393_p11 }
 0x27e   : > { %p1391_p8 = pneg %p1390_p5 }
 0x27f   : > { %p1397_p9 = por %p1396_p7, %p1395_p3 }
 0x281   : > { %p1398_p12 = pnand %p1397_p9, %p1391_p8 }
 0x283   : > { %1401 = shalt.err (!%p1398_p12)
}
 0x284   : > { %1166 = dma.vmem_to_hbm [thread:$0]  (%p1879_p0), %s1779_s8, 256, %s1777_s12, %s839_s18, %s1460_s29, %s1460_s29, %s1461_s16  }
 0x285 PF: > { %s888_s7 = sand.u32 1, %s1436_s21   ;;  %p1880_p2 = scmp.ne.s32.totalorder %s1866_s28, 0 }
 0x286   : > { %p1881_p13 = scmp.ge.s32.totalorder %s1448_s24, 2  ;;  %s889_s17 = scalar_lea.sflag [#allocation4], %s888_s7 }
 0x288   : > { %p1182_p6 = pnand %p1881_p13, %p1880_p2 }
 0x28a   : > { %1427 = dma.done.wait (!%p1182_p6), %s889_s17, 256  }
 0x28b   : > { %1429 = vsyncadd (!%p1182_p6), %s889_s17, 4294967040  ;;  %s898_s9 = scalar_lea.sflag [#allocation10], %s888_s7 }
 0x28c   : > { %1431 = dma.done.wait (!%p1182_p6), %s898_s9, 256  }
 0x28d   : > { %1433 = vsyncadd (!%p1182_p6), %s898_s9, 4294967040  ;;  %p24_p0 = scmp.ge.s32.totalorder %s1608_s26, 4   ;;  %s1882_s21 = smov %s1440_s22 }
 0x28e   : > { %s1883_s22 = smov %s1444_s23  ;;  %s1884_s23 = smov %s1624_s11 }
 0x28f   : > { %s1885_s24 = smov %s1608_s26  ;;  %26 = sbr.rel (!%p24_p0) target bundleno = 8 (0x8), region = 114 }
 0x296   :  { %903 = vsyncpa [#allocation3], 1 }
 0x297   :  { %905 = vsyncpa [#allocation3 + $0x1], 1 }
 0x298   :  { %906 = vsyncpa [#allocation6], 1 }
 0x299   :  { %907 = vsyncpa [#allocation4], 1 }
 0x29a   :  { %909 = vsyncpa [#allocation4 + $0x1], 1 }
 0x29b   :  { %910 = vsyncpa [#allocation10], 1 }
 0x29c   :  { %912 = vsyncpa [#allocation10 + $0x1], 1 }

</bundles_post_ra>
